<compile_context>
chip_gen: v7x
topology: tpu7x:2x2x1
jax: 0.10.0
libtpu: 0.0.40
codegen_flags: <defaults>
</compile_context>

<pallas_src>
import functools

import jax
import jax.numpy as jnp
from jax.experimental import pallas as pl
from jax.experimental.pallas import tpu as pltpu


def _round_up(a: int, m: int) -> int:
    return (a + m - 1) // m * m


def _pick_tile(limit: int, padded: int, unit: int) -> int:
    """Largest multiple of `unit` that divides `padded` and is <= limit."""
    t = max(unit, (min(limit, padded) // unit) * unit)
    while padded % t:
        t -= unit
    return t


# ----------------------------- kernels --------------------------------------


def _linear_kernel_single_k(x_ref, wt_ref, b_ref, o_ref):
    # x_ref:  (tm, K)   activation tile (full K)
    # wt_ref: (K, tn)   pre-transposed weight tile (IN, OUT layout)
    # b_ref:  (1, tn)   bias row tile
    # o_ref:  (tm, tn)  output tile
    o_ref[...] = (
        jnp.dot(x_ref[...], wt_ref[...], preferred_element_type=jnp.float32)
        + b_ref[...]
    ).astype(o_ref.dtype)


def _linear_kernel_multi_k(x_ref, wt_ref, b_ref, o_ref):
    # K is the innermost grid axis; o_ref's block index ignores k, so the
    # output block stays resident in VMEM across the whole K loop and we can
    # accumulate straight into it (f32 output == f32 accumulation, so no
    # separate scratch accumulator is needed).
    k = pl.program_id(2)
    partial = jnp.dot(x_ref[...], wt_ref[...], preferred_element_type=jnp.float32)

    @pl.when(k == 0)
    def _():
        o_ref[...] = partial.astype(o_ref.dtype)

    @pl.when(k > 0)
    def _():
        o_ref[...] += partial.astype(o_ref.dtype)

    @pl.when(k == pl.num_programs(2) - 1)
    def _():
        o_ref[...] += b_ref[...].astype(o_ref.dtype)


# ----------------------------- wrapper --------------------------------------

_FULL_K_MAX = 1024  # largest K kept as a single unpadded full-K block


@functools.partial(jax.jit, static_argnames=("tm", "tn", "tk"))
def linear_forward(x, weight, bias, *, tm=1024, tn=512, tk=512):
    """Pallas equivalent of nn.Linear forward: x @ weight.T + bias.

    x:      (batch, in_features)  float32
    weight: (out_features, in_features)   -- PyTorch nn.Linear layout
    bias:   (out_features,)
    """
    batch, in_features = x.shape
    out_features = weight.shape[0]
    itemsize = x.dtype.itemsize
    sublane = {4: 8, 2: 16, 1: 32}.get(itemsize, 8)

    # One-time layout change: (OUT, IN) -> (IN, OUT); no in-kernel transpose.
    wt = weight.T

    # ---- N (output features): pad only to the 128-lane layout minimum so
    # stores are lane-dense unmasked vst; tile is an exact divisor of pad_n.
    pad_n = _round_up(out_features, 128)
    tn = _pick_tile(tn, pad_n, 128)

    # ---- K (input features): prefer a single full-K block so x is never
    # copied / zero-padded in HBM (a block dim equal to the full array dim is
    # always legal).  Fall back to zero-padding K to the 128 minimum only for
    # large, misaligned K (zero columns contribute nothing to the dot).
    if in_features % 128 == 0:
        pad_k = in_features
        tk = _pick_tile(tk, pad_k, 128)
    elif in_features <= _FULL_K_MAX:
        pad_k = in_features
        tk = in_features
    else:
        pad_k = _round_up(in_features, 128)
        tk = _pick_tile(tk, pad_k, 128)
    n_k = pad_k // tk

    # ---- M (batch): never padded.  tm is either a multiple of the sublane
    # count (default 1024) or the full batch dim; any ragged edge block is
    # masked by Pallas and the padding rows never exist in HBM.
    tm = min(tm, batch)
    # Give both v7x TensorCores work if the parallel grid would otherwise
    # collapse to a single step with a large batch (neutral on 1-TC chips).
    if batch >= 512 and pl.cdiv(batch, tm) == 1 and pad_n // tn == 1:
        tm = _round_up(pl.cdiv(batch, 2), sublane)
    n_m = pl.cdiv(batch, tm)
    n_n = pad_n // tn

    # Pad the (small) weight / bias as needed; x is only padded along K in the
    # large-misaligned-K fallback above.
    x_p = x if pad_k == in_features else jnp.pad(
        x, ((0, 0), (0, pad_k - in_features)))
    wt_p = jnp.pad(wt, ((0, pad_k - in_features), (0, pad_n - out_features)))
    b_p = jnp.pad(bias, (0, pad_n - out_features)).reshape(1, pad_n)

    # Scoped-VMEM budget: double-buffered x/wt/bias/out tiles + headroom,
    # capped below the chip's physical VMEM (v7x: 64 MiB, v5e/v6e: 128 MiB).
    try:
        vmem_cap = int(pltpu.get_tpu_info().vmem_capacity_bytes)
    except Exception:  # conservative fallback if the query is unavailable
        vmem_cap = 64 * 1024 * 1024
    tile_bytes = 2 * (tm * tk + tk * tn + tn + tm * tn) * itemsize
    vmem_limit = int(min(max(2 * tile_bytes, 32 * 1024 * 1024), 0.9 * vmem_cap))

    if n_k == 1:
        kernel = _linear_kernel_single_k
        grid = (n_m, n_n)
        in_specs = [
            pl.BlockSpec((tm, tk), lambda i, j: (i, 0)),
            pl.BlockSpec((tk, tn), lambda i, j: (0, j)),
            pl.BlockSpec((1, tn), lambda i, j: (0, j)),
        ]
        out_specs = pl.BlockSpec((tm, tn), lambda i, j: (i, j))
        dims = ("parallel", "parallel")
    else:
        kernel = _linear_kernel_multi_k
        grid = (n_m, n_n, n_k)
        in_specs = [
            # x tile: varies with (batch tile i, k tile)
            pl.BlockSpec((tm, tk), lambda i, j, k: (i, k)),
            # weight tile: with k innermost the (K, tn) panel of W is
            # re-streamed once per batch tile; fine for small N, mitigated by
            # the large tm (few batch tiles) otherwise.
            pl.BlockSpec((tk, tn), lambda i, j, k: (k, j)),
            # bias row tile: only depends on the output-column tile j.
            pl.BlockSpec((1, tn), lambda i, j, k: (0, j)),
        ]
        # Output block index ignores k -> resident accumulator across K.
        out_specs = pl.BlockSpec((tm, tn), lambda i, j, k: (i, j))
        dims = ("parallel", "parallel", "arbitrary")

    out_p = pl.pallas_call(
        kernel,
        out_shape=jax.ShapeDtypeStruct((batch, pad_n), x.dtype),
        grid=grid,
        in_specs=in_specs,
        out_specs=out_specs,
        compiler_params=pltpu.CompilerParams(
            dimension_semantics=dims,
            vmem_limit_bytes=vmem_limit,
        ),
    )(x_p, wt_p, b_p)

    # Slice away the lane padding on the output-feature axis (no-op if N was
    # already a multiple of 128).
    return out_p[:, :out_features] if pad_n != out_features else out_p


if __name__ == "__main__":
    # Small shapes consistent with the module: input_size=32, output_size=8.
    batch, input_size, output_size = 8, 32, 8

    key = jax.random.PRNGKey(0)
    k_x, k_w, k_b = jax.random.split(key, 3)

    # Deterministic parameter init mimicking nn.Linear's uniform(-1/sqrt(in), 1/sqrt(in)).
    bound = 1.0 / (input_size ** 0.5)
    weight = jax.random.uniform(
        k_w, (output_size, input_size), jnp.float32, minval=-bound, maxval=bound
    )
    bias = jax.random.uniform(
        k_b, (output_size,), jnp.float32, minval=-bound, maxval=bound
    )
    x = jax.random.normal(k_x, (batch, input_size), jnp.float32)

    out = linear_forward(x, weight, bias)
    out = jax.block_until_ready(out)

    # Reference check in plain JAX.
    ref = x @ weight.T + bias
    assert out.shape == (batch, output_size)
    assert jnp.allclose(out, ref, atol=1e-5, rtol=1e-5)

    print("KERNEL_OK")
</pallas_src>

<mosaic_0001>
module attributes {stable_mosaic.version = 11 : i64} {
  func.func @_linear_kernel_single_k(%arg0: i32, %arg1: i32, %arg2: memref<8x32xf32, #tpu.memory_space<vmem>>, %arg3: memref<32x128xf32, #tpu.memory_space<vmem>>, %arg4: memref<1x128xf32, #tpu.memory_space<vmem>>, %arg5: memref<8x128xf32, #tpu.memory_space<vmem>>) attributes {dimension_semantics = [#tpu.dimension_semantics<parallel>, #tpu.dimension_semantics<parallel>], iteration_bounds = array<i64: 1, 1>, scalar_prefetch = 0 : i64, scratch_operands = 0 : i64, tpu.core_type = #tpu.core_type<tc>, window_params = [{transform_indices = @transform_0, window_bounds = array<i64: 8, 32>}, {transform_indices = @transform_1, window_bounds = array<i64: 32, 128>}, {transform_indices = @transform_2, window_bounds = array<i64: 1, 128>}, {transform_indices = @transform_3, window_bounds = array<i64: 8, 128>}]} {
    %c0 = arith.constant 0 : index
    %c0_0 = arith.constant 0 : index
    %0 = vector.load %arg2[%c0, %c0_0] : memref<8x32xf32, #tpu.memory_space<vmem>>, vector<8x32xf32>
    %c0_1 = arith.constant 0 : index
    %c0_2 = arith.constant 0 : index
    %1 = vector.load %arg3[%c0_1, %c0_2] : memref<32x128xf32, #tpu.memory_space<vmem>>, vector<32x128xf32>
    %cst = arith.constant dense<0.000000e+00> : vector<8x128xf32>
    %2 = tpu.matmul %0, %1, %cst {dimension_numbers = #tpu.dot_dimension_numbers<[1], [0], [0], [1], [0, 0, 1, 1], [], []>} : vector<8x32xf32>, vector<32x128xf32>, vector<8x128xf32> -> vector<8x128xf32>
    %c0_3 = arith.constant 0 : index
    %c0_4 = arith.constant 0 : index
    %3 = vector.load %arg4[%c0_3, %c0_4] : memref<1x128xf32, #tpu.memory_space<vmem>>, vector<1x128xf32>
    %4 = vector.broadcast %3 : vector<1x128xf32> to vector<8x128xf32>
    %5 = arith.addf %2, %4 : vector<8x128xf32>
    %c0_5 = arith.constant 0 : index
    %c0_6 = arith.constant 0 : index
    %6 = vector.load %arg5[%c0_5, %c0_6] : memref<8x128xf32, #tpu.memory_space<vmem>>, vector<8x128xf32>
    tpu.vector_store %arg5[%c0_5, %c0_6], %5 {strides = array<i32>} : memref<8x128xf32, #tpu.memory_space<vmem>>, vector<8x128xf32>,
    return
  }
  func.func @transform_0(%arg0: i32, %arg1: i32) -> (i32, i32) {
    %c0_i32 = arith.constant 0 : i32
    %c0_i32_0 = arith.constant 0 : i32
    return %arg0, %c0_i32 : i32, i32
  }
  func.func @transform_1(%arg0: i32, %arg1: i32) -> (i32, i32) {
    %c0_i32 = arith.constant 0 : i32
    %c0_i32_0 = arith.constant 0 : i32
    return %c0_i32, %arg1 : i32, i32
  }
  func.func @transform_2(%arg0: i32, %arg1: i32) -> (i32, i32) {
    %c0_i32 = arith.constant 0 : i32
    %c0_i32_0 = arith.constant 0 : i32
    return %c0_i32, %arg1 : i32, i32
  }
  func.func @transform_3(%arg0: i32, %arg1: i32) -> (i32, i32) {
    %c0_i32 = arith.constant 0 : i32
    return %arg0, %arg1 : i32, i32
  }
}

</mosaic_0001>

<bundles_post_ra>
// kernel: linear_forward.1
= control target key start
LH: loop header
LB: loop body
LE: loop exit
PB: predicated region body
PF: predicated region fallthrough
CT: control target
= control target key end

     0   :  { %v168_v3 = vmov 0.0|0.0   ;;  %vm169_vm0 = vmmov 0   ;;  %v170_v6 = vmov 0.0   ;;  %s222_s0 = inlined_call_operand.vmem [shape: f32[8,32], index: 0, kind: input, shape index: {}]   ;;  %s223_s1 = inlined_call_operand.vmem [shape: f32[32,128], index: 1, kind: input, shape index: {}]   ;;  %s224_s2 = inlined_call_operand.vmem [shape: f32[1,128], index: 2, kind: input, shape index: {}]   ;;  %s225_s3 = inlined_call_operand.hbm [shape: f32[8,128], index: 3, kind: output, shape index: {}]  }
   0x1   :  { %v16_v0 = vld [vmem:[%s223_s1] sm:$0xff]  ;;  %v17_v1 = vld [vmem:[%s223_s1 + $0x8] sm:$0xff]  ;;  %v18_v2 = vld [vmem:[%s223_s1 + $0x10] sm:$0xff]  ;;  %134 = vmatprep.subr.bf16.mxu0 %v168_v3  ;;  %131 = vmatprep.mubr.msk.f32.mxu0 %vm169_vm0, %v170_v6 }
   0x2   :  { %v135_v4 = vpack.c.bf16 %v17_v1, %v16_v0  ;;  %v19_v5 = vld [vmem:[%s223_s1 + $0x18] sm:$0xff] }
   0x3   :  { %8 = vsyncpa [#allocation3], 0  ;;  %v138_v7 = vpack.c.bf16 %v19_v5, %v18_v2  ;;  %v15_v8 = vld [vmem:[%s222_s0] sm:$0xff]  ;;  %vm27_vm1 = vcmask 261120   ;;  %s171_s24 = smov [#allocation2]  }
   0x4   :  { %136 = vmatpush3.bf16.msra.mxu0 %v135_v4  ;;  %v116_v9 = vld [vmem:[%s224_s2] ss:$0 sm:$0xff]  ;;  %s108_s1 = sshll.u32 %s171_s24, 4  ;;  %s109_s1 = int_to_ptr.vmem [resolvable:$true] %s108_s1 }
   0x5   :  { %137 = vmatprep.subr.bf16.mxu0 %v168_v3  ;;  %s144_s25 = scalar_lea.vmem %s109_s1, 128  ;;  %p149_p1 = scmp.lt.s32.totalorder %s109_s1, %s109_s1 }
   0x6   :  { %p145_p0 = scmp.ne.s32.totalorder %s109_s1, %s144_s25  ;;  %p150_p2 = scmp.lt.s32.totalorder %s144_s25, %s144_s25 }
   0x8   :  { %139 = vmatpush3.bf16.msra.mxu0 %v138_v7  ;;  %p151_p3 = por %p150_p2, %p149_p1 }
   0xa   :  { %p152_p4 = pnand %p151_p3, %p145_p0 }
   0xb   :  { %132 = vmatmul.mubr.msk.f32.vlgmr.msra.gmra.mrb[0].mxu0 %vm27_vm1, %v15_v8 }
  0xde   :  { %v97_v10 = vpop.f32.mrb[0].mxu0 }
  0xdf   :  { %v98_v11 = vadd.f32 %v116_v9, %v97_v10  ;;  %v133_v12 = vpop.f32.mrb[1].mxu0 }
  0xe1   :  { %101 = vst [vmem:[#allocation2] sm:$0xff] %v98_v11 }
  0xe2   :  { %155 = shalt.err (!%p152_p4)
}
  0xe3   :  { %s156_s27 = scalar_lea.hbm %s225_s3, 128 }
  0xe4   :  { %p157_p5 = scmp.ne.s32.totalorder %s225_s3, %s156_s27  ;;  %p160_p6 = scmp.lt.u32.totalorder %s156_s27, %s225_s3 }
  0xe6   :  { %p162_p7 = pnand %p160_p6, %p157_p5 }
  0xe8   :  { %165 = shalt.err (!%p162_p7)
}
  0xe9   :  { %111 = dma.vmem_to_hbm [thread:$0]  %s109_s1, 128, %s225_s3, [#allocation3]  }
  0xea   :  { %166 = dma.done.wait [#allocation3], 128  }
  0xeb   :  { %167 = vsyncadd [#allocation3], 4294967168 }
  0xec   :  { %115 = vsyncpa [#allocation3], 1 }

</bundles_post_ra>
